<compile_context>
chip_gen: v6e
topology: v6e:2x2x1
jax: 0.10.0
libtpu: 0.0.40
codegen_flags: <defaults>
</compile_context>

<pallas_src>
import functools

import jax
import jax.numpy as jnp
from jax.experimental import pallas as pl
from jax.experimental.pallas import tpu as pltpu


# ----------------------------------------------------------------------------
# Fused MLP kernel (built per model config; closure carries layer count)
# ----------------------------------------------------------------------------
def _make_mlp_kernel(n_layers):
    def kernel(x_ref, *refs):
        # refs = (w0, b0, w1, b1, ..., w_{L-1}, b_{L-1}, o_ref)
        o_ref = refs[-1]
        wb = refs[:-1]
        h = x_ref[...]  # [bt, Fin] bf16
        for i in range(n_layers):
            w = wb[2 * i][...]                       # [Fin_i, Fout_i] bf16
            bias = wb[2 * i + 1][...]                # [1, Fout_i] f32
            y = jnp.dot(h, w, preferred_element_type=jnp.float32) + bias
            if i < n_layers - 1:
                # ReLU (+ dropout == identity in eval mode); back to bf16 for
                # the next MXU matmul.
                h = jnp.maximum(y, 0.0).astype(jnp.bfloat16)
            else:
                # Final layer: numerically-stable log_softmax over dim=1, all
                # in float32 (EUP exp/log).
                m = jnp.max(y, axis=-1, keepdims=True)
                s = y - m
                lse = jnp.log(jnp.sum(jnp.exp(s), axis=-1, keepdims=True))
                o_ref[...] = (s - lse).astype(o_ref.dtype)

    return kernel


# ----------------------------------------------------------------------------
# Wrapper: one pallas_call for the entire network, gridded over batch only
# ----------------------------------------------------------------------------
@functools.partial(jax.jit, static_argnames=("batch_tile",))
def classifier_forward(x, params, *, batch_tile=256):
    # Flatten NCHW -> [B, C*H*W] (same memory order as torch's x.view(B, -1)).
    b = x.shape[0]
    h = x.reshape(b, -1).astype(jnp.bfloat16)
    fin = h.shape[1]
    fout = params[-1][0].shape[1]
    n_layers = len(params)

    # Choose the batch tile: full-extent block for small batches (legal for any
    # B because block == array extent); otherwise an (8,128)-friendly tile with
    # padding so the grid divides evenly.
    if b <= batch_tile:
        bt = b
        b_pad = b
    else:
        bt = batch_tile  # multiple of 8
        b_pad = ((b + bt - 1) // bt) * bt
        if b_pad != b:
            h = jnp.pad(h, ((0, b_pad - b), (0, 0)))
    grid = (b_pad // bt,)

    # BlockSpecs: activations tiled over batch; weights/biases full-extent and
    # batch-index-invariant (stay resident in VMEM across grid steps).
    in_specs = [pl.BlockSpec((bt, fin), lambda i: (i, 0))]
    flat_params = []
    for (w, bias) in params:
        in_specs.append(pl.BlockSpec(w.shape, lambda i: (0, 0)))
        in_specs.append(pl.BlockSpec(bias.shape, lambda i: (0, 0)))
        flat_params.append(w)
        flat_params.append(bias)

    out = pl.pallas_call(
        _make_mlp_kernel(n_layers),
        out_shape=jax.ShapeDtypeStruct((b_pad, fout), jnp.float32),
        grid=grid,
        in_specs=in_specs,
        out_specs=pl.BlockSpec((bt, fout), lambda i: (i, 0)),
        compiler_params=pltpu.CompilerParams(
            dimension_semantics=("parallel",),
        ),
    )(h, *flat_params)

    return out[:b]


# ----------------------------------------------------------------------------
# Parameter init (matches nn.Linear default: U(-1/sqrt(fan_in), +1/sqrt(fan_in)))
# ----------------------------------------------------------------------------
def init_classifier_params(key, layer_in, layer_out, layers_inside):
    sizes = [layer_in] + list(layers_inside) + [layer_out]
    params = []
    for i, (fin, fout) in enumerate(zip(sizes[:-1], sizes[1:])):
        kw, kb = jax.random.split(jax.random.fold_in(key, i))
        bound = 1.0 / jnp.sqrt(fin)
        # Weights stored pre-transposed [fin, fout] in bf16 for the MXU.
        w = jax.random.uniform(kw, (fin, fout), jnp.float32, -bound, bound)
        b = jax.random.uniform(kb, (1, fout), jnp.float32, -bound, bound)
        params.append((w.astype(jnp.bfloat16), b))
    return params


# ----------------------------------------------------------------------------
# Main
# ----------------------------------------------------------------------------
if __name__ == "__main__":
    key = jax.random.PRNGKey(0)
    k_x, k_p = jax.random.split(key)

    batch, channels, spatial = 2, 4, 16
    layer_in = channels * spatial * spatial  # 1024
    layers_inside = [128, 64]
    layer_out = 10

    x = jax.random.normal(k_x, (batch, channels, spatial, spatial), jnp.float32)
    params = init_classifier_params(k_p, layer_in, layer_out, layers_inside)

    out = classifier_forward(x, params)
    out = jax.block_until_ready(out)

    # Sanity checks: shape and log_softmax rows exponentiate+sum to 1.
    assert out.shape == (batch, layer_out)
    row_sums = jnp.exp(out).sum(axis=1)
    assert jnp.allclose(row_sums, jnp.ones_like(row_sums), atol=1e-5)
    assert bool(jnp.all(jnp.isfinite(out)))

    print("KERNEL_OK")
</pallas_src>

<mosaic_0001>
module attributes {stable_mosaic.version = 11 : i64} {
  func.func @kernel(%arg0: i32, %arg1: memref<2x1024xbf16, #tpu.memory_space<vmem>>, %arg2: memref<1024x128xbf16, #tpu.memory_space<vmem>>, %arg3: memref<1x128xf32, #tpu.memory_space<vmem>>, %arg4: memref<128x64xbf16, #tpu.memory_space<vmem>>, %arg5: memref<1x64xf32, #tpu.memory_space<vmem>>, %arg6: memref<64x10xbf16, #tpu.memory_space<vmem>>, %arg7: memref<1x10xf32, #tpu.memory_space<vmem>>, %arg8: memref<2x10xf32, #tpu.memory_space<vmem>>) attributes {dimension_semantics = [#tpu.dimension_semantics<parallel>], iteration_bounds = array<i64: 1>, scalar_prefetch = 0 : i64, scratch_operands = 0 : i64, tpu.core_type = #tpu.core_type<tc>, window_params = [{transform_indices = @transform_0, window_bounds = array<i64: 2, 1024>}, {pipeline_mode = #tpu.pipeline_mode<synchronous>, transform_indices = @transform_1, window_bounds = array<i64: 1024, 128>}, {pipeline_mode = #tpu.pipeline_mode<synchronous>, transform_indices = @transform_2, window_bounds = array<i64: 1, 128>}, {pipeline_mode = #tpu.pipeline_mode<synchronous>, transform_indices = @transform_3, window_bounds = array<i64: 128, 64>}, {pipeline_mode = #tpu.pipeline_mode<synchronous>, transform_indices = @transform_4, window_bounds = array<i64: 1, 64>}, {pipeline_mode = #tpu.pipeline_mode<synchronous>, transform_indices = @transform_5, window_bounds = array<i64: 64, 10>}, {pipeline_mode = #tpu.pipeline_mode<synchronous>, transform_indices = @transform_6, window_bounds = array<i64: 1, 10>}, {transform_indices = @transform_7, window_bounds = array<i64: 2, 10>}]} {
    %c0 = arith.constant 0 : index
    %c0_0 = arith.constant 0 : index
    %0 = vector.load %arg1[%c0, %c0_0] : memref<2x1024xbf16, #tpu.memory_space<vmem>>, vector<2x1024xbf16>
    %c0_1 = arith.constant 0 : index
    %c0_2 = arith.constant 0 : index
    %1 = vector.load %arg2[%c0_1, %c0_2] : memref<1024x128xbf16, #tpu.memory_space<vmem>>, vector<1024x128xbf16>
    %c0_3 = arith.constant 0 : index
    %c0_4 = arith.constant 0 : index
    %2 = vector.load %arg3[%c0_3, %c0_4] : memref<1x128xf32, #tpu.memory_space<vmem>>, vector<1x128xf32>
    %cst = arith.constant dense<0.000000e+00> : vector<2x128xf32>
    %3 = tpu.matmul %0, %1, %cst {dimension_numbers = #tpu.dot_dimension_numbers<[1], [0], [0], [1], [0, 0, 1, 1], [], []>} : vector<2x1024xbf16>, vector<1024x128xbf16>, vector<2x128xf32> -> vector<2x128xf32>
    %4 = vector.broadcast %2 : vector<1x128xf32> to vector<2x128xf32>
    %5 = arith.addf %3, %4 : vector<2x128xf32>
    %cst_5 = arith.constant 0.000000e+00 : f32
    %6 = vector.broadcast %cst_5 : f32 to vector<2x128xf32>
    %7 = arith.maximumf %5, %6 : vector<2x128xf32>
    %8 = arith.truncf %7 : vector<2x128xf32> to vector<2x128xbf16>
    %c0_6 = arith.constant 0 : index
    %c0_7 = arith.constant 0 : index
    %9 = vector.load %arg4[%c0_6, %c0_7] : memref<128x64xbf16, #tpu.memory_space<vmem>>, vector<128x64xbf16>
    %c0_8 = arith.constant 0 : index
    %c0_9 = arith.constant 0 : index
    %10 = vector.load %arg5[%c0_8, %c0_9] : memref<1x64xf32, #tpu.memory_space<vmem>>, vector<1x64xf32>
    %cst_10 = arith.constant dense<0.000000e+00> : vector<2x64xf32>
    %11 = tpu.matmul %8, %9, %cst_10 {dimension_numbers = #tpu.dot_dimension_numbers<[1], [0], [0], [1], [0, 0, 1, 1], [], []>} : vector<2x128xbf16>, vector<128x64xbf16>, vector<2x64xf32> -> vector<2x64xf32>
    %12 = vector.broadcast %10 : vector<1x64xf32> to vector<2x64xf32>
    %13 = arith.addf %11, %12 : vector<2x64xf32>
    %cst_11 = arith.constant 0.000000e+00 : f32
    %14 = vector.broadcast %cst_11 : f32 to vector<2x64xf32>
    %15 = arith.maximumf %13, %14 : vector<2x64xf32>
    %16 = arith.truncf %15 : vector<2x64xf32> to vector<2x64xbf16>
    %c0_12 = arith.constant 0 : index
    %c0_13 = arith.constant 0 : index
    %17 = vector.load %arg6[%c0_12, %c0_13] : memref<64x10xbf16, #tpu.memory_space<vmem>>, vector<64x10xbf16>
    %c0_14 = arith.constant 0 : index
    %c0_15 = arith.constant 0 : index
    %18 = vector.load %arg7[%c0_14, %c0_15] : memref<1x10xf32, #tpu.memory_space<vmem>>, vector<1x10xf32>
    %cst_16 = arith.constant dense<0.000000e+00> : vector<2x10xf32>
    %19 = tpu.matmul %16, %17, %cst_16 {dimension_numbers = #tpu.dot_dimension_numbers<[1], [0], [0], [1], [0, 0, 1, 1], [], []>} : vector<2x64xbf16>, vector<64x10xbf16>, vector<2x10xf32> -> vector<2x10xf32>
    %20 = vector.broadcast %18 : vector<1x10xf32> to vector<2x10xf32>
    %21 = arith.addf %19, %20 : vector<2x10xf32>
    %cst_17 = arith.constant dense<0xFF800000> : vector<2xf32>
    %22 = vector.multi_reduction <maximumf>, %21, %cst_17 [1] : vector<2x10xf32> to vector<2xf32>
    %23 = vector.shape_cast %22 : vector<2xf32> to vector<2x1xf32>
    %24 = vector.broadcast %23 : vector<2x1xf32> to vector<2x10xf32>
    %25 = arith.subf %21, %24 : vector<2x10xf32>
    %26 = math.exp %25 : vector<2x10xf32>
    %cst_18 = arith.constant dense<0.000000e+00> : vector<2xf32>
    %27 = vector.multi_reduction <add>, %26, %cst_18 [1] : vector<2x10xf32> to vector<2xf32>
    %28 = vector.shape_cast %27 : vector<2xf32> to vector<2x1xf32>
    %29 = math.log %28 : vector<2x1xf32>
    %30 = vector.broadcast %29 : vector<2x1xf32> to vector<2x10xf32>
    %31 = arith.subf %25, %30 : vector<2x10xf32>
    %c0_19 = arith.constant 0 : index
    %c0_20 = arith.constant 0 : index
    %32 = vector.load %arg8[%c0_19, %c0_20] : memref<2x10xf32, #tpu.memory_space<vmem>>, vector<2x10xf32>
    tpu.vector_store %arg8[%c0_19, %c0_20], %31 {strides = array<i32>} : memref<2x10xf32, #tpu.memory_space<vmem>>, vector<2x10xf32>,
    return
  }
  func.func @transform_0(%arg0: i32) -> (i32, i32) {
    %c0_i32 = arith.constant 0 : i32
    %c0_i32_0 = arith.constant 0 : i32
    return %arg0, %c0_i32 : i32, i32
  }
  func.func @transform_1(%arg0: i32) -> (i32, i32) {
    %c0_i32 = arith.constant 0 : i32
    %c0_i32_0 = arith.constant 0 : i32
    %c0_i32_1 = arith.constant 0 : i32
    return %c0_i32, %c0_i32_0 : i32, i32
  }
  func.func @transform_2(%arg0: i32) -> (i32, i32) {
    %c0_i32 = arith.constant 0 : i32
    %c0_i32_0 = arith.constant 0 : i32
    %c0_i32_1 = arith.constant 0 : i32
    return %c0_i32, %c0_i32_0 : i32, i32
  }
  func.func @transform_3(%arg0: i32) -> (i32, i32) {
    %c0_i32 = arith.constant 0 : i32
    %c0_i32_0 = arith.constant 0 : i32
    %c0_i32_1 = arith.constant 0 : i32
    return %c0_i32, %c0_i32_0 : i32, i32
  }
  func.func @transform_4(%arg0: i32) -> (i32, i32) {
    %c0_i32 = arith.constant 0 : i32
    %c0_i32_0 = arith.constant 0 : i32
    %c0_i32_1 = arith.constant 0 : i32
    return %c0_i32, %c0_i32_0 : i32, i32
  }
  func.func @transform_5(%arg0: i32) -> (i32, i32) {
    %c0_i32 = arith.constant 0 : i32
    %c0_i32_0 = arith.constant 0 : i32
    %c0_i32_1 = arith.constant 0 : i32
    return %c0_i32, %c0_i32_0 : i32, i32
  }
  func.func @transform_6(%arg0: i32) -> (i32, i32) {
    %c0_i32 = arith.constant 0 : i32
    %c0_i32_0 = arith.constant 0 : i32
    %c0_i32_1 = arith.constant 0 : i32
    return %c0_i32, %c0_i32_0 : i32, i32
  }
  func.func @transform_7(%arg0: i32) -> (i32, i32) {
    %c0_i32 = arith.constant 0 : i32
    %c0_i32_0 = arith.constant 0 : i32
    return %arg0, %c0_i32 : i32, i32
  }
}

</mosaic_0001>

<bundles_post_ra>
// kernel: classifier_forward.1
= control target key start
LH: loop header
LB: loop body
LE: loop exit
PB: predicated region body
PF: predicated region fallthrough
CT: control target
= control target key end

     0   :  { %12 = vsyncpa [#allocation3], 0  ;;  %s1484_s0 = inlined_call_operand.vmem [shape: bf16[2,1024], index: 0, kind: input, shape index: {}]   ;;  %s1485_s1 = inlined_call_operand.hbm [shape: bf16[1024,128], index: 1, kind: input, shape index: {}]   ;;  %s1486_s2 = inlined_call_operand.vmem [shape: f32[1,128], index: 2, kind: input, shape index: {}]   ;;  %s1487_s3 = inlined_call_operand.vmem [shape: bf16[128,64], index: 3, kind: input, shape index: {}]   ;;  %s1488_s4 = inlined_call_operand.vmem [shape: f32[1,64], index: 4, kind: input, shape index: {}]   ;;  %s1489_s5 = inlined_call_operand.vmem [shape: bf16[64,10], index: 5, kind: input, shape index: {}]   ;;  %s1490_s6 = inlined_call_operand.vmem [shape: f32[1,10], index: 6, kind: input, shape index: {}]   ;;  %s1491_s7 = inlined_call_operand.hbm [shape: f32[2,10], index: 7, kind: output, shape index: {}]  }
   0x1   :  { %13 = vsyncpa [#allocation4], 0  ;;  %s1353_s24 = smov [#allocation2]  }
   0x2   :  { %s21_s25 = sshll.u32 %s1353_s24, 4  ;;  %s22_s25 = int_to_ptr.vmem [resolvable:$true] %s21_s25 }
   0x3   :  { %s1317_s26 = scalar_lea.vmem %s22_s25, 8192  ;;  %p1322_p1 = scmp.lt.s32.totalorder %s22_s25, %s22_s25 }
   0x4   :  { %p1318_p0 = scmp.ne.s32.totalorder %s22_s25, %s1317_s26  ;;  %p1323_p2 = scmp.lt.s32.totalorder %s1317_s26, %s1317_s26 }
   0x6   :  { %p1324_p3 = por %p1323_p2, %p1322_p1 }
   0x8   :  { %p1325_p4 = pnand %p1324_p3, %p1318_p0 }
   0xa   :  { %1328 = shalt.err (!%p1325_p4)
}
   0xb   :  { %s1354_s27 = smov 64   ;;  %s1355_s28 = smov 4  }
   0xc   :  { %27 = dma.hbm_to_vmem [thread:$0]  %s1485_s1, 8192, %s22_s25, [#allocation3], %s1354_s27, %s1354_s27, %s1355_s28  }
   0xd   :  { %1349 = dma.done.wait [#allocation3], 8192  }
   0xe   :  { %1350 = vsyncadd [#allocation3], 4294959104  ;;  %v1228_v0 = vld [vmem:[#allocation2 + $0x78] sm:$0xff]   ;;  %v1232_v4 = vld [vmem:[#allocation2 + $0x70] sm:$0xff]   ;;  %v1356_v22 = vmov 1966171168   ;;  %v183_v24 = vlaneseq }
   0xf   :  { %v1229_v1 = vld [vmem:[#allocation2 + $0xf8] sm:$0xff]   ;;  %1087 = vmatprep.subr.bf16.mxu0 %v1228_v0  ;;  %v1233_v5 = vld [vmem:[#allocation2 + $0xf0] sm:$0xff]   ;;  %v1236_v8 = vld [vmem:[#allocation2 + $0x68] sm:$0xff]   ;;  %v181_v23 = vunpack.c.l.s4 %v1356_v22  ;;  %vm1358_vm0 = vmmov 0   ;;  %vm934_vm1 = vcmask 523264   ;;  %vm978_vm2 = vcmask 74752  }
  0x10   :  { %v1230_v2 = vld [vmem:[#allocation2 + $0x38] sm:$0xff]   ;;  %1109 = vmatprep.subr.bf16.mxu1 %v1229_v1  ;;  %v1234_v6 = vld [vmem:[#allocation2 + $0x30] sm:$0xff]   ;;  %v1237_v9 = vld [vmem:[#allocation2 + $0xe8] sm:$0xff]   ;;  %v184_v30 = vshrl.u32 %v183_v24, 7 }
  0x11   :  { %v1231_v3 = vld [vmem:[#allocation2 + $0xb8] sm:$0xff]   ;;  %1088 = vmatpush3.bf16.msra.mxu0 %v1230_v2  ;;  %v1235_v7 = vld [vmem:[#allocation2 + $0xb0] sm:$0xff]   ;;  %v1238_v10 = vld [vmem:[#allocation2 + $0x28] sm:$0xff]   ;;  %v182_v29 = vunpack.c.0.s8 %v181_v23 }
  0x12   :  { %1110 = vmatpush3.bf16.msra.mxu1 %v1231_v3  ;;  %1089 = vmatprep.subr.bf16.mxu0 %v1232_v4  ;;  %v1239_v11 = vld [vmem:[#allocation2 + $0xa8] sm:$0xff]   ;;  %v1240_v12 = vld [vmem:[#allocation2 + $0x60] sm:$0xff]   ;;  %v1244_v16 = vld [vmem:[#allocation2 + $0x58] sm:$0xff]  }
  0x13   :  { %1111 = vmatprep.subr.bf16.mxu1 %v1233_v5  ;;  %v1241_v13 = vld [vmem:[#allocation2 + $0xe0] sm:$0xff]   ;;  %v1245_v17 = vld [vmem:[#allocation2 + $0xd8] sm:$0xff]   ;;  %v1248_v20 = vld [vmem:[#allocation2 + $0x50] sm:$0xff]   ;;  %v1403_v35 = vsub.s32 %v182_v29, %v184_v30 }
  0x14   :  { %v1242_v14 = vld [vmem:[#allocation2 + $0x20] sm:$0xff]   ;;  %v1246_v18 = vld [vmem:[#allocation2 + $0x18] sm:$0xff]   ;;  %v1249_v21 = vld [vmem:[#allocation2 + $0xd0] sm:$0xff]  }
  0x15   :  { %1090 = vmatpush3.bf16.msra.mxu0 %v1234_v6  ;;  %v1243_v15 = vld [vmem:[#allocation2 + $0xa0] sm:$0xff]   ;;  %v1247_v19 = vld [vmem:[#allocation2 + $0x98] sm:$0xff]   ;;  %v1250_v25 = vld [vmem:[#allocation2 + $0x10] sm:$0xff]  }
  0x16   :  { %1112 = vmatpush3.bf16.msra.mxu1 %v1235_v7  ;;  %1091 = vmatprep.subr.bf16.mxu0 %v1236_v8  ;;  %v1251_v26 = vld [vmem:[#allocation2 + $0x90] sm:$0xff]   ;;  %v1252_v27 = vld [vmem:[#allocation2 + $0x48] sm:$0xff]   ;;  %v1256_v33 = vld [vmem:[#allocation2 + $0x40] sm:$0xff]  }
  0x17   :  { %1113 = vmatprep.subr.bf16.mxu1 %v1237_v9  ;;  %v1253_v28 = vld [vmem:[#allocation2 + $0xc8] sm:$0xff]   ;;  %v1257_v34 = vld [vmem:[#allocation2 + $0xc0] sm:$0xff]   ;;  %v1261_v41 = vld [vmem:[#allocation2 + $0x178] sm:$0xff]  }
  0x18   :  { %v1254_v31 = vld [vmem:[#allocation2 + $0x8] sm:$0xff]   ;;  %v1258_v36 = vld [vmem:[#allocation2] sm:$0xff]   ;;  %v1262_v42 = vld [vmem:[#allocation2 + $0x1f8] sm:$0xff]  }
  0x19   :  { %1092 = vmatpush3.bf16.msra.mxu0 %v1238_v10  ;;  %v1255_v32 = vld [vmem:[#allocation2 + $0x88] sm:$0xff]   ;;  %v1259_v37 = vld [vmem:[#allocation2 + $0x80] sm:$0xff]   ;;  %v1263_v46 = vld [vmem:[#allocation2 + $0x138] sm:$0xff]  }
  0x1a   :  { %1114 = vmatpush3.bf16.msra.mxu1 %v1239_v11  ;;  %1093 = vmatprep.subr.bf16.mxu0 %v1240_v12  ;;  %v42_v38 = vld [vmem:[%s1484_s0] sm:$0xff]  ;;  %v1264_v48 = vld [vmem:[#allocation2 + $0x1b8] sm:$0xff]   ;;  %v1265_v51 = vld [vmem:[#allocation2 + $0x170] sm:$0xff]  }
  0x1b   :  { %1115 = vmatprep.subr.bf16.mxu1 %v1241_v13  ;;  %v179_v39 = vcombine.high %v42_v38, %v42_v38  ;;  %v186_v40 = vrot.slane %v42_v38, %v1403_v35  ;;  %v1266_v53 = vld [vmem:[#allocation2 + $0x1f0] sm:$0xff]   ;;  %v1269_v58 = vld [vmem:[#allocation2 + $0x168] sm:$0xff]   ;;  %v1273_v62 = vld [vmem:[#allocation2 + $0x160] sm:$0xff]  }
  0x1c   :  { %v1267_v55 = vld [vmem:[#allocation2 + $0x130] sm:$0xff]   ;;  %v1270_v59 = vld [vmem:[#allocation2 + $0x1e8] sm:$0xff]   ;;  %v1274_v63 = vld [vmem:[#allocation2 + $0x1e0] sm:$0xff]  }
  0x1d   :  { %1094 = vmatpush3.bf16.msra.mxu0 %v1242_v14  ;;  %v194_v43 = vcombine.high %v186_v40, %v186_v40  ;;  %v202_v44 = vrot.slane %v186_v40, %v1403_v35  ;;  %v1411_v45 = vrot.slane %v179_v39, %v1403_v35  ;;  %v1268_v56 = vld [vmem:[#allocation2 + $0x1b0] sm:$0xff]   ;;  %v1271_v60 = vld [vmem:[#allocation2 + $0x128] sm:$0xff]   ;;  %v1275_v0 = vld [vmem:[#allocation2 + $0x120] sm:$0xff]  }
  0x1e   :  { %1116 = vmatpush3.bf16.msra.mxu1 %v1243_v15  ;;  %1095 = vmatprep.subr.bf16.mxu0 %v1244_v16  ;;  %v1272_v61 = vld [vmem:[#allocation2 + $0x1a8] sm:$0xff]   ;;  %v1276_v1 = vld [vmem:[#allocation2 + $0x1a0] sm:$0xff]   ;;  %v1277_v2 = vld [vmem:[#allocation2 + $0x158] sm:$0xff]  }
  0x1f   :  { %1117 = vmatprep.subr.bf16.mxu1 %v1245_v17  ;;  %v216_v47 = vrot.slane %v194_v43, %v1403_v35  ;;  %v195_v49 = vcombine.high %v1411_v45, %v1411_v45  ;;  %v224_v50 = vcombine.high %v202_v44, %v202_v44  ;;  %v1278_v3 = vld [vmem:[#allocation2 + $0x1d8] sm:$0xff]   ;;  %v1281_v6 = vld [vmem:[#allocation2 + $0x150] sm:$0xff]   ;;  %v1285_v10 = vld [vmem:[#allocation2 + $0x148] sm:$0xff]  }
  0x20   :  { %v1279_v4 = vld [vmem:[#allocation2 + $0x118] sm:$0xff]   ;;  %v1282_v7 = vld [vmem:[#allocation2 + $0x1d0] sm:$0xff]   ;;  %v1286_v11 = vld [vmem:[#allocation2 + $0x1c8] sm:$0xff]  }
  0x21   :  { %1096 = vmatpush3.bf16.msra.mxu0 %v1246_v18  ;;  %652 = vmatprep.mubr.bf16.mxu0 %v216_v47  ;;  %v226_v52 = vcombine.high %v216_v47, %v216_v47  ;;  %v223_v54 = vrot.slane %v195_v49, %v1403_v35  ;;  %v1280_v5 = vld [vmem:[#allocation2 + $0x198] sm:$0xff]   ;;  %v1283_v8 = vld [vmem:[#allocation2 + $0x110] sm:$0xff]   ;;  %v1287_v12 = vld [vmem:[#allocation2 + $0x108] sm:$0xff]   ;;  %v209_v18 = vrot.slane %v1411_v45, %v1403_v35 }
  0x22   :  { %1118 = vmatpush3.bf16.msra.mxu1 %v1247_v19  ;;  %1097 = vmatprep.subr.bf16.mxu0 %v1248_v20  ;;  %v1284_v9 = vld [vmem:[#allocation2 + $0x190] sm:$0xff]   ;;  %v1288_v13 = vld [vmem:[#allocation2 + $0x188] sm:$0xff]   ;;  %v1289_v14 = vld [vmem:[#allocation2 + $0x140] sm:$0xff]  }
  0x23   :  { %1119 = vmatprep.subr.bf16.mxu1 %v1249_v21  ;;  %692 = vmatprep.mubr.bf16.mxu1 %v226_v52  ;;  %v227_v57 = vcombine.high %v223_v54, %v223_v54  ;;  %v1290_v15 = vld [vmem:[#allocation2 + $0x1c0] sm:$0xff]   ;;  %v225_v19 = vcombine.high %v209_v18, %v209_v18  ;;  %v1293_v20 = vld [vmem:[%s1487_s3 + $0x38] sm:$0xff]   ;;  %v1357_v21 = vmov 0.0   ;;  %v1294_v22 = vld [vmem:[%s1487_s3 + $0x30] sm:$0xff]  }
  0x24   :  { %v1291_v16 = vld [vmem:[#allocation2 + $0x100] sm:$0xff]   ;;  %v1295_v23 = vld [vmem:[%s1487_s3 + $0x28] sm:$0xff]   ;;  %v1301_v29 = vld [vmem:[%s1489_s5 + $0x18] sm:$0xff]  }
  0x25   :  { %1098 = vmatpush3.bf16.msra.mxu0 %v1250_v25  ;;  %v1292_v17 = vld [vmem:[#allocation2 + $0x180] sm:$0xff]   ;;  %v1297_v25 = vld [vmem:[%s1487_s3 + $0x18] sm:$0xff]   ;;  %v1302_v30 = vld [vmem:[%s1489_s5 + $0x10] sm:$0xff]  }
  0x26   :  { %1120 = vmatpush3.bf16.msra.mxu1 %v1251_v26  ;;  %1099 = vmatprep.subr.bf16.mxu0 %v1252_v27  ;;  %v1296_v24 = vld [vmem:[%s1487_s3 + $0x20] sm:$0xff]   ;;  %v1298_v26 = vld [vmem:[%s1487_s3 + $0x10] sm:$0xff]   ;;  %v1299_v27 = vld [vmem:[%s1487_s3 + $0x8] sm:$0xff]  }
  0x27   :  { %1121 = vmatprep.subr.bf16.mxu1 %v1253_v28  ;;  %v1300_v28 = vld [vmem:[%s1487_s3] sm:$0xff]  }
  0x28   :  { %v1007_v40 = vld [vmem:[%s1486_s2] ss:$0 sm:$0xff] }
  0x29   :  { %1100 = vmatpush3.bf16.msra.mxu0 %v1254_v31 }
  0x2a   :  { %1122 = vmatpush3.bf16.msra.mxu1 %v1255_v32  ;;  %1101 = vmatprep.subr.bf16.mxu0 %v1256_v33 }
  0x2b   :  { %1123 = vmatprep.subr.bf16.mxu1 %v1257_v34 }
  0x2d   :  { %1102 = vmatpush3.bf16.msra.mxu0 %v1258_v36 }
  0x2e   :  { %1124 = vmatpush3.bf16.msra.mxu1 %v1259_v37  ;;  %1131 = vmatprep.subr.bf16.mxu0 %v1261_v41 }
  0x2f   :  { %1153 = vmatprep.subr.bf16.mxu1 %v1262_v42 }
  0x30   :  { %653 = vmatmul.mubr.bf16.vlgmr.msra.gmra.mxu0 %v202_v44 }
  0x31   :  { %1132 = vmatpush3.bf16.msra.mxu0 %v1263_v46  ;;  %693 = vmatmul.mubr.bf16.vlgmr.msra.gmra.mxu1 %v224_v50 }
  0x32   :  { %1133 = vmatprep.subr.bf16.mxu0 %v1265_v51  ;;  %1154 = vmatpush3.bf16.msra.mxu1 %v1264_v48 }
  0x33   :  { %732 = vmatprep.mubr.bf16.mxu0 %v223_v54  ;;  %1155 = vmatprep.subr.bf16.mxu1 %v1266_v53 }
  0x34   :  { %772 = vmatprep.mubr.bf16.mxu1 %v227_v57 }
  0x35   :  { %1134 = vmatpush3.bf16.msra.mxu0 %v1267_v55 }
  0x36   :  { %1135 = vmatprep.subr.bf16.mxu0 %v1269_v58  ;;  %1156 = vmatpush3.bf16.msra.mxu1 %v1268_v56  ;;  %v1303_v58 = vld [vmem:[%s1489_s5 + $0x8] sm:$0xff]  }
  0x37   :  { %1157 = vmatprep.subr.bf16.mxu1 %v1270_v59  ;;  %v1304_v59 = vld [vmem:[%s1489_s5] sm:$0xff]  }
  0x39   :  { %1136 = vmatpush3.bf16.msra.mxu0 %v1271_v60  ;;  %v1072_v60 = vld [vmem:[%s1488_s4] ss:$0 sm:$0xff]  ;;  %s1359_s4 = smov [#allocation5]  }
  0x3a   :  { %1137 = vmatprep.subr.bf16.mxu0 %v1273_v62  ;;  %1158 = vmatpush3.bf16.msra.mxu1 %v1272_v61  ;;  %s998_s5 = sshll.u32 %s1359_s4, 4  ;;  %s999_s5 = int_to_ptr.vmem [resolvable:$true] %s998_s5 }
  0x3b   :  { %1159 = vmatprep.subr.bf16.mxu1 %v1274_v63  ;;  %p1334_p6 = scmp.lt.s32.totalorder %s999_s5, %s999_s5 }
  0x3d   :  { %1138 = vmatpush3.bf16.msra.mxu0 %v1275_v0 }
  0x3e   :  { %1139 = vmatprep.subr.bf16.mxu0 %v1277_v2  ;;  %1160 = vmatpush3.bf16.msra.mxu1 %v1276_v1 }
  0x3f   :  { %1161 = vmatprep.subr.bf16.mxu1 %v1278_v3 }
  0x41   :  { %1140 = vmatpush3.bf16.msra.mxu0 %v1279_v4  ;;  %v1081_v4 = vld [vmem:[%s1490_s6] ss:$0 sm:$0xff]  ;;  %s1329_s6 = scalar_lea.vmem %s999_s5, 32 }
  0x42   :  { %1141 = vmatprep.subr.bf16.mxu0 %v1281_v6  ;;  %1162 = vmatpush3.bf16.msra.mxu1 %v1280_v5  ;;  %p1330_p5 = scmp.ne.s32.totalorder %s999_s5, %s1329_s6  ;;  %p1335_p7 = scmp.lt.s32.totalorder %s1329_s6, %s1329_s6 }
  0x43   :  { %1163 = vmatprep.subr.bf16.mxu1 %v1282_v7 }
  0x44   :  { %p1336_p8 = por %p1335_p7, %p1334_p6 }
  0x45   :  { %1142 = vmatpush3.bf16.msra.mxu0 %v1283_v8 }
  0x46   :  { %1143 = vmatprep.subr.bf16.mxu0 %v1285_v10  ;;  %1164 = vmatpush3.bf16.msra.mxu1 %v1284_v9  ;;  %p1337_p9 = pnand %p1336_p8, %p1330_p5 }
  0x47   :  { %1165 = vmatprep.subr.bf16.mxu1 %v1286_v11 }
  0x49   :  { %1144 = vmatpush3.bf16.msra.mxu0 %v1287_v12 }
  0x4a   :  { %1145 = vmatprep.subr.bf16.mxu0 %v1289_v14  ;;  %1166 = vmatpush3.bf16.msra.mxu1 %v1288_v13 }
  0x4b   :  { %1167 = vmatprep.subr.bf16.mxu1 %v1290_v15 }
  0x4d   :  { %1146 = vmatpush3.bf16.msra.mxu0 %v1291_v16 }
  0x4e   :  { %1168 = vmatpush3.bf16.msra.mxu1 %v1292_v17  ;;  %1189 = vmatprep.subr.bf16.mxu0 %v1357_v21 }
  0x4f   :  { %1209 = vmatprep.subr.bf16.mxu1 %v1357_v21 }
  0x50   :  { %733 = vmatmul.mubr.bf16.vlgmr.msra.gmra.mxu0 %v209_v18 }
  0x51   :  { %773 = vmatmul.mubr.bf16.vlgmr.msra.gmra.mxu1 %v225_v19  ;;  %1190 = vmatpush3.bf16.msra.mxu0 %v1293_v20 }
  0x52   :  { %1191 = vmatprep.subr.bf16.mxu0 %v1357_v21  ;;  %1205 = vmatprep.mubr.msk.bf16.mxu0 %vm1358_vm0, %v1357_v21 }
  0x53   :  { %1217 = vmatprep.mubr.msk.bf16.mxu1 %vm1358_vm0, %v1357_v21  ;;  %1210 = vmatpush3.bf16.msra.mxu1 %v1301_v29 }
  0x54   :  { %1211 = vmatprep.subr.bf16.mxu1 %v1357_v21 }
  0x55   :  { %1192 = vmatpush3.bf16.msra.mxu0 %v1294_v22 }
  0x56   :  { %1193 = vmatprep.subr.bf16.mxu0 %v1357_v21 }
  0x57   :  { %1212 = vmatpush3.bf16.msra.mxu1 %v1302_v30 }
  0x58   :  { %1213 = vmatprep.subr.bf16.mxu1 %v1357_v21 }
  0x59   :  { %1194 = vmatpush3.bf16.msra.mxu0 %v1295_v23 }
  0x5a   :  { %1195 = vmatprep.subr.bf16.mxu0 %v1357_v21 }
  0x5b   :  { %1214 = vmatpush3.bf16.msra.mxu1 %v1303_v58 }
  0x5c   :  { %1215 = vmatprep.subr.bf16.mxu1 %v1357_v21 }
  0x5d   :  { %1196 = vmatpush3.bf16.msra.mxu0 %v1296_v24 }
  0x5e   :  { %1197 = vmatprep.subr.bf16.mxu0 %v1357_v21 }
  0x5f   :  { %1216 = vmatpush3.bf16.msra.mxu1 %v1304_v59 }
  0x61   :  { %1198 = vmatpush3.bf16.msra.mxu0 %v1297_v25 }
  0x62   :  { %1199 = vmatprep.subr.bf16.mxu0 %v1357_v21 }
  0x65   :  { %1200 = vmatpush3.bf16.msra.mxu0 %v1298_v26 }
  0x66   :  { %1201 = vmatprep.subr.bf16.mxu0 %v1357_v21 }
  0x69   :  { %1202 = vmatpush3.bf16.msra.mxu0 %v1299_v27 }
  0x6a   :  { %1203 = vmatprep.subr.bf16.mxu0 %v1357_v21 }
  0x6d   :  { %1204 = vmatpush3.bf16.msra.mxu0 %v1300_v28 }
  0xf0   :  { %v1103_v31 = vpop.f32.mrf.mxu0 }
  0xf1   :  { %v1125_v32 = vpop.f32.mrf.mxu1 }
  0xf2   :  { %v1104_v33 = vpop.f32.mrf.mxu0 }
  0xf3   :  { %v1126_v34 = vpop.f32.mrf.mxu1  ;;  %v1105_v39 = vadd.f32 %v1104_v33, %v1103_v31 }
  0xf4   :  { %v1106_v35 = vpop.f32.mrf.mxu0  ;;  %v1127_v42 = vadd.f32 %v1126_v34, %v1125_v32 }
  0xf5   :  { %v1128_v36 = vpop.f32.mrf.mxu1  ;;  %v655_v41 = vadd.f32 %v1105_v39, %v1007_v40 }
  0xf6   :  { %v1107_v37 = vpop.f32.mrf.mxu0 }
  0xf7   :  { %v1129_v38 = vpop.f32.mrf.mxu1  ;;  %v695_v46 = vadd.f32 %v1127_v42, %v655_v41 }
 0x110   :  { %v1147_v43 = vpop.f32.mrf.mxu0 }
 0x111   :  { %v1169_v44 = vpop.f32.mrf.mxu1 }
 0x112   :  { %v1148_v45 = vpop.f32.mrf.mxu0 }
 0x113   :  { %v1149_v47 = vadd.f32 %v1148_v45, %v1147_v43  ;;  %v1170_v48 = vpop.f32.mrf.mxu1 }
 0x114   :  { %v1150_v49 = vpop.f32.mrf.mxu0  ;;  %v1171_v51 = vadd.f32 %v1170_v48, %v1169_v44 }
 0x115   :  { %v735_v50 = vadd.f32 %v1149_v47, %v695_v46  ;;  %v1172_v52 = vpop.f32.mrf.mxu1 }
 0x116   :  { %v1151_v53 = vpop.f32.mrf.mxu0 }
 0x117   :  { %v775_v54 = vadd.f32 %v1171_v51, %v735_v50  ;;  %v1173_v55 = vpop.f32.mrf.mxu1 }
 0x119   :  { %v780_v56 = vmax.f32 %v775_v54, 0.0 }
 0x11b   :  { %v781_v57 = vpack.c.bf16 %v780_v56, %v780_v56 }
 0x11d   :  { %1206 = vmatmul.mubr.bf16.vlgmr.msra.gmra.mxu0 %v781_v57 }
 0x1dd   :  { %v887_v61 = vpop.f32.mrf.mxu0 }
 0x1de   :  { %v888_v62 = vadd.f32 %v1072_v60, %v887_v61 }
 0x1df   :  { %v1207_v63 = vpop.f32.mrf.mxu0 }
 0x1e0   :  { %v893_v0 = vmax.f32 %v888_v62, 0.0 }
 0x1e1   :  { %v890_v1 = vpop.f32.mrf.mxu0 }
 0x1e2   :  { %v894_v2 = vpack.c.bf16 %v893_v0, %v893_v0 }
 0x1e3   :  { %v1208_v3 = vpop.f32.mrf.mxu0 }
 0x1e4   :  { %1218 = vmatmul.mubr.msk.bf16.vlgmr.msra.gmra.mxu1 %vm934_vm1, %v894_v2 }
 0x2a4   :  { %v972_v5 = vpop.f32.mrf.mxu1 }
 0x2a5   :  { %v973_v6 = vadd.f32 %v1081_v4, %v972_v5 }
 0x2a6   :  { %v1219_v7 = vpop.f32.mrf.mxu1 }
 0x2a7   :  { %v979_v8 = vsel %vm978_vm2, %v973_v6, -inf }
 0x2a8   :  { %980 = vmax.xlane.f32.xlu0 %v979_v8  ;;  %v975_v9 = vpop.f32.mrf.mxu1 }
 0x2aa   :  { %v1220_v10 = vpop.f32.mrf.mxu1 }
 0x331   :  { %v981_v11 = vpop.xlane.xlu0 %980 }
 0x332   :  { %v982_v12 = vsub.f32 %v973_v6, %v981_v11 }
 0x334   :  { %v983_v13 = vmul.f32 1.442695, %v982_v12 }
 0x336   :  { %1305 = vpow2.f32 %v983_v13 }
 0x343   :  { %v1306_v14 = vpop.eup %1305 }
 0x344   :  { %v985_v15 = vsel %vm978_vm2, %v1306_v14, 0.0 }
 0x345   :  { %986 = vadd.xlane.f32.xlu0 %v985_v15 }
 0x3ce   :  { %v987_v16 = vpop.xlane.xlu0 %986 }
 0x3cf   :  { %1307 = vlog2.f32 %v987_v16 }
 0x3dc   :  { %v1308_v17 = vpop.eup %1307 }
 0x3dd   :  { %v989_v18 = vmul.f32 0.6931472, %v1308_v17 }
 0x3df   :  { %v990_v19 = vsub.f32 %v982_v12, %v989_v18 }
 0x3e1   :  { %991 = vst.msk [vmem:[#allocation5] sm:$0x3] %vm978_vm2, %v990_v19 }
 0x3e2   :  { %1340 = shalt.err (!%p1337_p9)
}
 0x3e3   :  { %1001 = dma.vmem_to_hbm [thread:$0]  %s999_s5, 32, %s1491_s7, [#allocation4]  }
 0x3e4   :  { %1351 = dma.done.wait [#allocation4], 32  }
 0x3e5   :  { %1352 = vsyncadd [#allocation4], 4294967264 }
 0x3e6   :  { %1005 = vsyncpa [#allocation3], 1 }
 0x3e7   :  { %1006 = vsyncpa [#allocation4], 1 }

</bundles_post_ra>
